<compile_context>
chip_gen: v7x
topology: tpu7x:2x2x1
jax: 0.10.0
libtpu: 0.0.40
codegen_flags: <defaults>
</compile_context>

<pallas_src>
import functools

import numpy as np
import jax
import jax.numpy as jnp
from jax import lax
from jax.experimental import pallas as pl
from jax.experimental.pallas import tpu as pltpu

_EPS_BN = 1e-5


def _rup(x, m):
    return ((x + m - 1) // m) * m


# ------------------------------- demo config ---------------------------------
# Real IDLoss values:  CROP = (35, 223, 32, 220), POOL_SIZE = 112,
# STAGES = [(64,64,3),(64,128,4),(128,256,14),(256,512,3)], EMB = 512.
CROP = (35, 223, 32, 220)              # exactly as in IDLoss.extract_feats
POOL_SIZE = 32                         # face_pool target (112 in the real model)
STAGES = [(32, 32, 1), (32, 64, 1)]    # (in_ch, depth, num_units) per stage
EMB = 128                              # embedding dim (512 in the real model)

UNIT_CFGS = []
for _cin, _depth, _n in STAGES:
    for _u in range(_n):
        UNIT_CFGS.append((_cin if _u == 0 else _depth, _depth, 2 if _u == 0 else 1))


# ------------------------------ Pallas kernels --------------------------------

def _matmul_fused_kernel(a_ref, b_ref, s_ref, c_ref, p_ref, o_ref, acc_ref, *, act):
    """out = act((A @ B) * scale + bias); scale/bias/slope are per-out-channel."""
    @pl.when(pl.program_id(2) == 0)
    def _():
        acc_ref[...] = jnp.zeros_like(acc_ref)

    acc_ref[...] += jnp.dot(a_ref[...], b_ref[...],
                            preferred_element_type=jnp.float32)

    @pl.when(pl.program_id(2) == pl.num_programs(2) - 1)
    def _():
        y = acc_ref[...] * s_ref[...] + c_ref[...]
        if act == "relu":
            y = jnp.maximum(y, 0.0)
        elif act == "sigmoid":
            y = 1.0 / (1.0 + jnp.exp(-y))
        elif act == "prelu":
            y = jnp.where(y >= 0.0, y, p_ref[...] * y)
        o_ref[...] = y


def _affine_kernel(x_ref, s_ref, b_ref, o_ref):
    o_ref[...] = x_ref[...] * s_ref[...] + b_ref[...]


def _gap_kernel(x_ref, o_ref, *, inv_hw):
    @pl.when(pl.program_id(1) == 0)
    def _():
        o_ref[...] = jnp.zeros_like(o_ref)
    o_ref[...] += jnp.sum(x_ref[...], axis=1, keepdims=True) * inv_hw


def _se_res_kernel(r_ref, g_ref, s_ref, o_ref):
    o_ref[...] = r_ref[...] * g_ref[...] + s_ref[...]


def _id_loss_kernel(a_ref, b_ref, o_ref, *, feat_dim):
    a = a_ref[...]
    b = b_ref[...]
    an = a * lax.rsqrt(jnp.sum(a * a, axis=1, keepdims=True))   # l2_norm (ArcFace)
    bn = b * lax.rsqrt(jnp.sum(b * b, axis=1, keepdims=True))
    d = an - bn                       # padded rows of a/b are identical -> d == 0
    o_ref[...] = jnp.sum(d * d, axis=(0, 1), keepdims=True) * (1.0 / feat_dim)


# ------------------------------ Pallas wrappers --------------------------------

@functools.partial(jax.jit, static_argnames=("act",))
def matmul_fused(a, b, scale, bias, slope, *, act="none"):
    M, K = a.shape
    _, N = b.shape
    if M >= 512:
        tm = 512
    elif M >= 256:
        tm = 256
    else:
        tm = _rup(max(M, 1), 16)            # small-M path (SE FCs, embedding FC)
    Mp = _rup(M, tm)
    tk = min(512, _rup(K, 128))
    Kp = _rup(K, tk)
    tn = min(256, _rup(N, 128))
    Np = _rup(N, tn)

    a_p = jnp.pad(a.astype(jnp.bfloat16), ((0, Mp - M), (0, Kp - K)))
    b_p = jnp.pad(b.astype(jnp.bfloat16), ((0, Kp - K), (0, Np - N)))
    s_p = jnp.pad(scale.reshape(1, N).astype(jnp.float32), ((0, 0), (0, Np - N)))
    c_p = jnp.pad(bias.reshape(1, N).astype(jnp.float32), ((0, 0), (0, Np - N)))
    p_p = jnp.pad(slope.reshape(1, N).astype(jnp.float32), ((0, 0), (0, Np - N)))

    vec_spec = pl.BlockSpec((1, tn), lambda i, j, k: (0, j))
    out = pl.pallas_call(
        functools.partial(_matmul_fused_kernel, act=act),
        out_shape=jax.ShapeDtypeStruct((Mp, Np), jnp.float32),
        grid=(Mp // tm, Np // tn, Kp // tk),
        in_specs=[pl.BlockSpec((tm, tk), lambda i, j, k: (i, k)),
                  pl.BlockSpec((tk, tn), lambda i, j, k: (k, j)),
                  vec_spec, vec_spec, vec_spec],
        out_specs=pl.BlockSpec((tm, tn), lambda i, j, k: (i, j)),
        scratch_shapes=[pltpu.VMEM((tm, tn), jnp.float32)],
        compiler_params=pltpu.CompilerParams(
            dimension_semantics=("parallel", "parallel", "arbitrary")),
    )(a_p, b_p, s_p, c_p, p_p)
    return out[:M, :N]


def mm(a, b, scale=None, bias=None, slope=None, act="none"):
    N = b.shape[1]
    if scale is None:
        scale = jnp.ones((1, N), jnp.float32)
    if bias is None:
        bias = jnp.zeros((1, N), jnp.float32)
    if slope is None:
        slope = jnp.ones((1, N), jnp.float32)
    return matmul_fused(a, b, scale, bias, slope, act=act)


@jax.jit
def affine(x, scale, bias):
    M, C = x.shape
    Cp = _rup(C, 128)
    tm = min(1024, _rup(M, 8))
    Mp = _rup(M, tm)
    xp = jnp.pad(x.astype(jnp.float32), ((0, Mp - M), (0, Cp - C)))
    sp = jnp.pad(scale.reshape(1, C).astype(jnp.float32), ((0, 0), (0, Cp - C)))
    bp = jnp.pad(bias.reshape(1, C).astype(jnp.float32), ((0, 0), (0, Cp - C)))
    out = pl.pallas_call(
        _affine_kernel,
        out_shape=jax.ShapeDtypeStruct((Mp, Cp), jnp.float32),
        grid=(Mp // tm,),
        in_specs=[pl.BlockSpec((tm, Cp), lambda i: (i, 0)),
                  pl.BlockSpec((1, Cp), lambda i: (0, 0)),
                  pl.BlockSpec((1, Cp), lambda i: (0, 0))],
        out_specs=pl.BlockSpec((tm, Cp), lambda i: (i, 0)),
        compiler_params=pltpu.CompilerParams(dimension_semantics=("parallel",)),
    )(xp, sp, bp)
    return out[:M, :C]


def affine_nhwc(x, scale, bias):
    B, H, W, C = x.shape
    return affine(x.reshape(B * H * W, C), scale, bias).reshape(B, H, W, C)


@jax.jit
def global_avg_pool(x):
    B, H, W, C = x.shape
    HW = H * W
    Cp = _rup(C, 128)
    thw = 1024 if HW > 1024 else _rup(HW, 8)
    HWp = _rup(HW, thw)
    xp = jnp.pad(x.reshape(B, HW, C), ((0, 0), (0, HWp - HW), (0, Cp - C)))
    out = pl.pallas_call(
        functools.partial(_gap_kernel, inv_hw=1.0 / HW),
        out_shape=jax.ShapeDtypeStruct((B, 1, Cp), jnp.float32),
        grid=(B, HWp // thw),
        in_specs=[pl.BlockSpec((1, thw, Cp), lambda b, h: (b, h, 0))],
        out_specs=pl.BlockSpec((1, 1, Cp), lambda b, h: (b, 0, 0)),
        compiler_params=pltpu.CompilerParams(
            dimension_semantics=("parallel", "arbitrary")),
    )(xp)
    return out[:, 0, :C]


@jax.jit
def se_residual(res, gate, shortcut):
    B, H, W, C = res.shape
    HW = H * W
    Cp = _rup(C, 128)
    thw = 1024 if HW > 1024 else _rup(HW, 8)
    HWp = _rup(HW, thw)
    r = jnp.pad(res.reshape(B, HW, C), ((0, 0), (0, HWp - HW), (0, Cp - C)))
    s = jnp.pad(shortcut.reshape(B, HW, C), ((0, 0), (0, HWp - HW), (0, Cp - C)))
    g = jnp.pad(gate.reshape(B, 1, C), ((0, 0), (0, 0), (0, Cp - C)))
    big = pl.BlockSpec((1, thw, Cp), lambda b, h: (b, h, 0))
    out = pl.pallas_call(
        _se_res_kernel,
        out_shape=jax.ShapeDtypeStruct((B, HWp, Cp), jnp.float32),
        grid=(B, HWp // thw),
        in_specs=[big, pl.BlockSpec((1, 1, Cp), lambda b, h: (b, 0, 0)), big],
        out_specs=big,
        compiler_params=pltpu.CompilerParams(
            dimension_semantics=("parallel", "parallel")),
    )(r, g, s)
    return out[:, :HW, :C].reshape(B, H, W, C)


@jax.jit
def id_loss_from_feats(y_feats, y_hat_feats):
    n, c = y_feats.shape
    npad = _rup(n, 8)
    ones = jnp.ones((npad - n, c), jnp.float32)          # identical pad rows cancel
    a = jnp.concatenate([y_feats.astype(jnp.float32), ones], axis=0)
    b = jnp.concatenate([y_hat_feats.astype(jnp.float32), ones], axis=0)
    out = pl.pallas_call(
        functools.partial(_id_loss_kernel, feat_dim=float(c)),
        out_shape=jax.ShapeDtypeStruct((1, 1), jnp.float32),
        grid=(1,),
        in_specs=[pl.BlockSpec((npad, c), lambda i: (0, 0)),
                  pl.BlockSpec((npad, c), lambda i: (0, 0))],
        out_specs=pl.BlockSpec((1, 1), lambda i: (0, 0)),
    )(a, b)
    return out[0, 0]


# --------------------------- conv / pooling glue -------------------------------

def _im2col(x, ksize, stride, pad):
    # x: (B, H, W, C) NHWC -> (B, oh, ow, ksize*ksize*C)
    B, H, W, C = x.shape
    if pad:
        x = jnp.pad(x, ((0, 0), (pad, pad), (pad, pad), (0, 0)))
    Hp, Wp = H + 2 * pad, W + 2 * pad
    oh = (Hp - ksize) // stride + 1
    ow = (Wp - ksize) // stride + 1
    cols = []
    for i in range(ksize):
        for j in range(ksize):
            cols.append(x[:, i:i + stride * oh:stride, j:j + stride * ow:stride, :])
    return jnp.concatenate(cols, axis=-1), oh, ow


def conv2d(x, w, ksize, stride, pad, scale=None, bias=None, slope=None, act="none"):
    # w: (ksize*ksize*Cin, Cout); ArcFace convs have no bias.  BN / activation
    # after the conv are fused into the matmul epilogue via scale/bias/slope.
    # TODO(synk): im2col is still materialised (bf16); a halo-tiled direct-conv
    # Pallas kernel is left for the full-size model.
    B = x.shape[0]
    cols, oh, ow = _im2col(x.astype(jnp.bfloat16), ksize, stride, pad)
    K = cols.shape[-1]
    y = mm(cols.reshape(B * oh * ow, K), w, scale, bias, slope, act)
    return y.reshape(B, oh, ow, w.shape[1])


def _adaptive_pool_matrix(in_size, out_size):
    # AdaptiveAvgPool1d as an (in, out) averaging matrix (PyTorch window rule).
    P = np.zeros((in_size, out_size), np.float32)
    for o in range(out_size):
        s = (o * in_size) // out_size
        e = ((o + 1) * in_size + out_size - 1) // out_size
        P[s:e, o] = 1.0 / (e - s)
    return jnp.asarray(P)


_POOL_T = _adaptive_pool_matrix(CROP[1] - CROP[0], POOL_SIZE)   # (188, POOL_SIZE)


def adaptive_avg_pool(x):
    # x: (B, S_in, S_in, C) -> (B, POOL_SIZE, POOL_SIZE, C); separable -> 2 matmuls.
    B, H, W, C = x.shape
    S = _POOL_T.shape[1]
    xt = jnp.transpose(x, (0, 2, 3, 1)).reshape(B * W * C, H)
    xh = mm(xt, _POOL_T).reshape(B, W, C, S)
    xw = jnp.transpose(xh, (0, 3, 2, 1)).reshape(B * S * C, W)
    xw = mm(xw, _POOL_T).reshape(B, S, C, S)
    return jnp.transpose(xw, (0, 1, 3, 2))


# ------------------------------- parameters ------------------------------------

def _conv_w(key, kh, kw, cin, cout):
    std = (2.0 / (kh * kw * cin)) ** 0.5
    w = std * jax.random.normal(key, (kh, kw, cin, cout), jnp.float32)
    return w.reshape(kh * kw * cin, cout)


def _bn_params(key, c):
    # eval-mode BN folded into per-channel scale/bias.
    k1, k2, k3, k4 = jax.random.split(key, 4)
    gamma = 1.0 + 0.1 * jax.random.normal(k1, (c,), jnp.float32)
    beta = 0.1 * jax.random.normal(k2, (c,), jnp.float32)
    mean = 0.1 * jax.random.normal(k3, (c,), jnp.float32)
    var = 1.0 + 0.1 * jax.random.uniform(k4, (c,), jnp.float32)
    scale = gamma / jnp.sqrt(var + _EPS_BN)
    bias = beta - mean * scale
    return scale.reshape(1, c), bias.reshape(1, c)


def _init_unit(key, cin, depth):
    ks = jax.random.split(key, 8)
    red = max(depth // 16, 1)           # SEModule(depth, 16)
    p = {
        "bn1": _bn_params(ks[0], cin),
        "w1": _conv_w(ks[1], 3, 3, cin, depth),
        "prelu": jnp.full((1, depth), 0.25, jnp.float32),
        "w2": _conv_w(ks[2], 3, 3, depth, depth),
        "bn2": _bn_params(ks[3], depth),
        "se_w1": _conv_w(ks[4], 1, 1, depth, red),
        "se_w2": _conv_w(ks[5], 1, 1, red, depth),
    }
    if cin != depth:
        p["sc_w"] = _conv_w(ks[6], 1, 1, cin, depth)
        p["sc_bn"] = _bn_params(ks[7], depth)
    return p


def init_params(key):
    ks = jax.random.split(key, 6 + len(UNIT_CFGS))
    c0 = STAGES[0][0]
    c_last = STAGES[-1][1]
    out_sp = POOL_SIZE // (2 ** len(STAGES))
    flat = c_last * out_sp * out_sp
    return {
        "in_conv": _conv_w(ks[0], 3, 3, 3, c0),
        "in_bn": _bn_params(ks[1], c0),
        "in_prelu": jnp.full((1, c0), 0.25, jnp.float32),
        "out_bn2d": _bn_params(ks[2], c_last),
        "fc_w": (1.0 / flat ** 0.5)
                * jax.random.normal(ks[3], (flat, EMB), jnp.float32),
        "fc_b": 0.01 * jax.random.normal(ks[4], (EMB,), jnp.float32),
        "out_bn1d": _bn_params(ks[5], EMB),
        "units": [_init_unit(ks[6 + i], cin, depth)
                  for i, (cin, depth, _s) in enumerate(UNIT_CFGS)],
    }


# --------------------------------- forward --------------------------------------

def bottleneck_ir_se(x, p, cfg):
    cin, depth, stride = cfg
    # shortcut branch
    if cin == depth:
        shortcut = x[:, ::stride, ::stride, :]                 # MaxPool2d(1, stride)
    else:
        sc_s, sc_b = p["sc_bn"]
        shortcut = conv2d(x, p["sc_w"], 1, stride, 0, scale=sc_s, bias=sc_b)
    # residual branch: BN -> conv3x3 (+PReLU fused) -> conv3x3(stride) (+BN fused) -> SE
    s1, b1 = p["bn1"]
    r = affine_nhwc(x, s1, b1)
    r = conv2d(r, p["w1"], 3, 1, 1, slope=p["prelu"], act="prelu")
    s2, b2 = p["bn2"]
    r = conv2d(r, p["w2"], 3, stride, 1, scale=s2, bias=b2)
    # SE (reduction 16): GAP -> fc1 (+ReLU fused) -> fc2 (+Sigmoid fused) -> gate
    m = global_avg_pool(r)                                     # (B, depth)
    h = mm(m, p["se_w1"], act="relu")
    g = mm(h, p["se_w2"], act="sigmoid")
    return se_residual(r, g, shortcut)                         # r * gate + shortcut


def extract_feats(params, x_nchw):
    r0, r1, c0, c1 = CROP
    x = x_nchw[:, :, r0:r1, c0:c1].astype(jnp.float32)         # x[:, :, 35:223, 32:220]
    x = jnp.transpose(x, (0, 2, 3, 1))                         # NCHW -> NHWC
    x = adaptive_avg_pool(x)                                   # face_pool
    # input layer: conv3x3 -> BN -> PReLU (BN+PReLU fused into the conv epilogue)
    s, b = params["in_bn"]
    x = conv2d(x, params["in_conv"], 3, 1, 1, scale=s, bias=b,
               slope=params["in_prelu"], act="prelu")
    # body: bottleneck_IR_SE units
    for cfg, p in zip(UNIT_CFGS, params["units"]):
        x = bottleneck_ir_se(x, p, cfg)
    # output layer: BN2d -> Dropout(eval no-op) -> Flatten -> Linear -> BN1d
    s, b = params["out_bn2d"]
    x = affine_nhwc(x, s, b)
    B, H, W, C = x.shape
    x = jnp.transpose(x, (0, 3, 1, 2)).reshape(B, C * H * W)   # NCHW flatten order
    s1, b1 = params["out_bn1d"]
    fused_bias = b1 + s1 * params["fc_b"].reshape(1, -1)       # fold linear bias into BN1d
    x = mm(x, params["fc_w"], scale=s1, bias=fused_bias)
    # NOTE: the l2_norm at the end of Backbone.forward is applied inside the
    # loss kernel (its only consumer), which is mathematically identical.
    return x                                                    # (B, EMB)


def id_loss(params, y_hat, y):
    y_feats = lax.stop_gradient(extract_feats(params, y))      # .detach() in torch
    y_hat_feats = extract_feats(params, y_hat)
    # loss = sum_{i in range(5)} mean((y_feats[i] - y_hat_feats[i])**2)
    return id_loss_from_feats(y_feats[:5], y_hat_feats[:5])


# ----------------------------------- main ---------------------------------------

if __name__ == "__main__":
    key = jax.random.PRNGKey(0)
    pkey, k1, k2 = jax.random.split(key, 3)
    params = init_params(pkey)
    # forward() indexes feats[0..4] -> batch must be >= 5; crop needs >= 223x220.
    B, C, H, W = 5, 3, 224, 224
    y_hat = jax.random.normal(k1, (B, C, H, W), jnp.float32)
    y = jax.random.normal(k2, (B, C, H, W), jnp.float32)
    loss = id_loss(params, y_hat, y)
    jax.block_until_ready(loss)
    print("KERNEL_OK")
</pallas_src>

<mosaic_0001>
module attributes {stable_mosaic.version = 11 : i64} {
  func.func @_matmul_fused_kernel(%arg0: i32, %arg1: i32, %arg2: i32, %arg3: memref<512x256xbf16, #tpu.memory_space<vmem>>, %arg4: memref<256x128xbf16, #tpu.memory_space<vmem>>, %arg5: memref<1x128xf32, #tpu.memory_space<vmem>>, %arg6: memref<1x128xf32, #tpu.memory_space<vmem>>, %arg7: memref<1x128xf32, #tpu.memory_space<vmem>>, %arg8: memref<512x128xf32, #tpu.memory_space<vmem>>, %arg9: memref<512x128xf32, #tpu.memory_space<vmem>>) attributes {dimension_semantics = [#tpu.dimension_semantics<parallel>, #tpu.dimension_semantics<parallel>, #tpu.dimension_semantics<arbitrary>], iteration_bounds = array<i64: 6, 1, 1>, scalar_prefetch = 0 : i64, scratch_operands = 1 : i64, tpu.core_type = #tpu.core_type<tc>, window_params = [{transform_indices = @transform_0, window_bounds = array<i64: 512, 256>}, {transform_indices = @transform_1, window_bounds = array<i64: 256, 128>}, {transform_indices = @transform_2, window_bounds = array<i64: 1, 128>}, {transform_indices = @transform_3, window_bounds = array<i64: 1, 128>}, {transform_indices = @transform_4, window_bounds = array<i64: 1, 128>}, {transform_indices = @transform_5, window_bounds = array<i64: 512, 128>}]} {
    %c0_i32 = arith.constant 0 : i32
    %0 = arith.cmpi eq, %arg2, %c0_i32 : i32
    %1 = arith.extui %0 : i1 to i32
    %c0_i32_0 = arith.constant 0 : i32
    %2 = arith.cmpi ne, %1, %c0_i32_0 : i32
    scf.if %2 {
      %cst_10 = arith.constant 0.000000e+00 : f32
      %12 = vector.broadcast %cst_10 : f32 to vector<512x128xf32>
      %c0_11 = arith.constant 0 : index
      %c0_12 = arith.constant 0 : index
      %13 = vector.load %arg9[%c0_11, %c0_12] : memref<512x128xf32, #tpu.memory_space<vmem>>, vector<512x128xf32>
      tpu.vector_store %arg9[%c0_11, %c0_12], %12 {strides = array<i32>} : memref<512x128xf32, #tpu.memory_space<vmem>>, vector<512x128xf32>,
    } else {
    }
    %c0 = arith.constant 0 : index
    %c0_1 = arith.constant 0 : index
    %3 = vector.load %arg9[%c0, %c0_1] : memref<512x128xf32, #tpu.memory_space<vmem>>, vector<512x128xf32>
    %c0_2 = arith.constant 0 : index
    %c0_3 = arith.constant 0 : index
    %4 = vector.load %arg3[%c0_2, %c0_3] : memref<512x256xbf16, #tpu.memory_space<vmem>>, vector<512x256xbf16>
    %c0_4 = arith.constant 0 : index
    %c0_5 = arith.constant 0 : index
    %5 = vector.load %arg4[%c0_4, %c0_5] : memref<256x128xbf16, #tpu.memory_space<vmem>>, vector<256x128xbf16>
    %cst = arith.constant dense<0.000000e+00> : vector<512x128xf32>
    %6 = tpu.matmul %4, %5, %cst {dimension_numbers = #tpu.dot_dimension_numbers<[1], [0], [0], [1], [0, 0, 1, 1], [], []>} : vector<512x256xbf16>, vector<256x128xbf16>, vector<512x128xf32> -> vector<512x128xf32>
    %7 = arith.addf %3, %6 : vector<512x128xf32>
    %c0_6 = arith.constant 0 : index
    %c0_7 = arith.constant 0 : index
    %8 = vector.load %arg9[%c0_6, %c0_7] : memref<512x128xf32, #tpu.memory_space<vmem>>, vector<512x128xf32>
    tpu.vector_store %arg9[%c0_6, %c0_7], %7 {strides = array<i32>} : memref<512x128xf32, #tpu.memory_space<vmem>>, vector<512x128xf32>,
    %c0_i32_8 = arith.constant 0 : i32
    %9 = arith.cmpi eq, %arg2, %c0_i32_8 : i32
    %10 = arith.extui %9 : i1 to i32
    %c0_i32_9 = arith.constant 0 : i32
    %11 = arith.cmpi ne, %10, %c0_i32_9 : i32
    scf.if %11 {
      %c0_10 = arith.constant 0 : index
      %c0_11 = arith.constant 0 : index
      %12 = vector.load %arg9[%c0_10, %c0_11] : memref<512x128xf32, #tpu.memory_space<vmem>>, vector<512x128xf32>
      %c0_12 = arith.constant 0 : index
      %c0_13 = arith.constant 0 : index
      %13 = vector.load %arg5[%c0_12, %c0_13] : memref<1x128xf32, #tpu.memory_space<vmem>>, vector<1x128xf32>
      %14 = vector.broadcast %13 : vector<1x128xf32> to vector<512x128xf32>
      %15 = arith.mulf %12, %14 : vector<512x128xf32>
      %c0_14 = arith.constant 0 : index
      %c0_15 = arith.constant 0 : index
      %16 = vector.load %arg6[%c0_14, %c0_15] : memref<1x128xf32, #tpu.memory_space<vmem>>, vector<1x128xf32>
      %17 = vector.broadcast %16 : vector<1x128xf32> to vector<512x128xf32>
      %18 = arith.addf %15, %17 : vector<512x128xf32>
      %c0_16 = arith.constant 0 : index
      %c0_17 = arith.constant 0 : index
      %19 = vector.load %arg8[%c0_16, %c0_17] : memref<512x128xf32, #tpu.memory_space<vmem>>, vector<512x128xf32>
      tpu.vector_store %arg8[%c0_16, %c0_17], %18 {strides = array<i32>} : memref<512x128xf32, #tpu.memory_space<vmem>>, vector<512x128xf32>,
    } else {
    }
    return
  }
  func.func @transform_0(%arg0: i32, %arg1: i32, %arg2: i32) -> (i32, i32) {
    %c0_i32 = arith.constant 0 : i32
    return %arg0, %arg2 : i32, i32
  }
  func.func @transform_1(%arg0: i32, %arg1: i32, %arg2: i32) -> (i32, i32) {
    %c0_i32 = arith.constant 0 : i32
    return %arg2, %arg1 : i32, i32
  }
  func.func @transform_2(%arg0: i32, %arg1: i32, %arg2: i32) -> (i32, i32) {
    %c0_i32 = arith.constant 0 : i32
    %c0_i32_0 = arith.constant 0 : i32
    return %c0_i32, %arg1 : i32, i32
  }
  func.func @transform_3(%arg0: i32, %arg1: i32, %arg2: i32) -> (i32, i32) {
    %c0_i32 = arith.constant 0 : i32
    %c0_i32_0 = arith.constant 0 : i32
    return %c0_i32, %arg1 : i32, i32
  }
  func.func @transform_4(%arg0: i32, %arg1: i32, %arg2: i32) -> (i32, i32) {
    %c0_i32 = arith.constant 0 : i32
    %c0_i32_0 = arith.constant 0 : i32
    return %c0_i32, %arg1 : i32, i32
  }
  func.func @transform_5(%arg0: i32, %arg1: i32, %arg2: i32) -> (i32, i32) {
    %c0_i32 = arith.constant 0 : i32
    return %arg0, %arg1 : i32, i32
  }
}

</mosaic_0001>

<bundles_post_ra>
// kernel: matmul_fused.1
= control target key start
LH: loop header
LB: loop body
LE: loop exit
PB: predicated region body
PF: predicated region fallthrough
CT: control target
= control target key end

     0   :  { %s2145_s18 = smov 0   ;;  %s2147_s19 = smov 0   ;;  %s2535_s0 = inlined_call_operand.vmem [shape: bf16[3072,256], index: 0, kind: input, shape index: {}]   ;;  %s2536_s1 = inlined_call_operand.vmem [shape: bf16[256,128], index: 1, kind: input, shape index: {}]   ;;  %s2537_s2 = inlined_call_operand.vmem [shape: f32[1,128], index: 2, kind: input, shape index: {}]   ;;  %s2538_s3 = inlined_call_operand.vmem [shape: f32[1,128], index: 3, kind: input, shape index: {}]   ;;  %s2539_s4 = inlined_call_operand.vmem [shape: f32[1,128], index: 4, kind: input, shape index: {}]   ;;  %s2540_s5 = inlined_call_operand.vmem [shape: f32[3072,128], index: 5, kind: output, shape index: {}]  }
   0x1   :  { %s2149_s20 = smov 0  }
   0x2 LB: > { %s34_s4 = sadd.s32 1, %s2108_s19  ;;  %p1830_p0 = scmp.ge.s32.totalorder %s2112_s20, 1  ;;  %s2112_s20 = sphi %s2149_s20, %s15_s20   ;;  %s2108_s19 = sphi %s2147_s19, %s2542_s19   ;;  %s2104_s18 = sphi %s2145_s18, %s2541_s18  }
   0x3   : > { %p36_p1 = scmp.ge.s32.totalorder %s34_s4, 6  ;;  %p257_p2 = scmp.lt.s32.totalorder %s2112_s20, 7 }
   0x5   : > { %s2544_s4 = smov (%p36_p1, %s34_s4), 0  ;;  %p258_p3 = pnand %p1830_p0, %p257_p2 }
   0x6   : > { %v1978_v0 = vld [vmem:[%s2536_s1] sm:$0xff] (!%p258_p3)   ;;  %v2114_v1 = vmov (!%p258_p3), 0   ;;  %s1831_s23 = sshll.u32 (!%p258_p3), %s2104_s18, 6  ;;  %v1979_v2 = vld [vmem:[%s2536_s1 + $0x8] sm:$0xff] (!%p258_p3)   ;;  %v1980_v3 = vld [vmem:[%s2536_s1 + $0x10] sm:$0xff] (!%p258_p3)  }
   0x7   : > { %261 = sbr.rel (%p258_p3) target bundleno = 410 (0x19a), region = 40  ;;  %994 = vmatprep.subr.bf16.mxu0 (!%p258_p3), %v2114_v1  ;;  %1921 = vmatprep.subr.bf16.mxu1 (!%p258_p3), %v2114_v1  ;;  %p312_p4 = scmp.lt.s32.totalorder (!%p258_p3), %s1831_s23, 383  ;;  %v1981_v4 = vld [vmem:[%s2536_s1 + $0x18] sm:$0xff] (!%p258_p3)   ;;  %v1982_v5 = vld [vmem:[%s2536_s1 + $0x20] sm:$0xff] (!%p258_p3)   ;;  %v1983_v7 = vld [vmem:[%s2536_s1 + $0x28] sm:$0xff] (!%p258_p3)  }
   0x8   : > { %995 = vmatpush1.bf16.msra.mxu0 (!%p258_p3), %v1978_v0  ;;  %1937 = vmatpush1.bf16.msra.mxu1 (!%p258_p3), %v1978_v0  ;;  %v1984_v9 = vld [vmem:[%s2536_s1 + $0x30] sm:$0xff] (!%p258_p3)   ;;  %v1985_v10 = vld [vmem:[%s2536_s1 + $0x38] sm:$0xff] (!%p258_p3)   ;;  %v1986_v11 = vld [vmem:[%s2536_s1 + $0x40] sm:$0xff] (!%p258_p3)  }
   0x9   : > { %996 = vmatprep.subr.bf16.mxu0 (!%p258_p3), %v2114_v1  ;;  %1922 = vmatprep.subr.bf16.mxu1 (!%p258_p3), %v2114_v1  ;;  %v1987_v12 = vld [vmem:[%s2536_s1 + $0x48] sm:$0xff] (!%p258_p3)   ;;  %v1988_v13 = vld [vmem:[%s2536_s1 + $0x50] sm:$0xff] (!%p258_p3)   ;;  %v1989_v14 = vld [vmem:[%s2536_s1 + $0x58] sm:$0xff] (!%p258_p3)  }
   0xa   : > { %v1990_v15 = vld [vmem:[%s2536_s1 + $0x60] sm:$0xff] (!%p258_p3)   ;;  %v1991_v16 = vld [vmem:[%s2536_s1 + $0x68] sm:$0xff] (!%p258_p3)   ;;  %v1992_v17 = vld [vmem:[%s2536_s1 + $0x70] sm:$0xff] (!%p258_p3)  }
   0xb   : > { %v1993_v18 = vld [vmem:[%s2536_s1 + $0x78] sm:$0xff] (!%p258_p3)  }
   0xc   : > { %997 = vmatpush1.bf16.msra.mxu0 (!%p258_p3), %v1979_v2  ;;  %1938 = vmatpush1.bf16.msra.mxu1 (!%p258_p3), %v1979_v2 }
   0xd   : > { %998 = vmatprep.subr.bf16.mxu0 (!%p258_p3), %v2114_v1  ;;  %1923 = vmatprep.subr.bf16.mxu1 (!%p258_p3), %v2114_v1 }
   0xe   : > { %s2546_s23 = smov (!%p312_p4, %s1831_s23), 383 }
   0xf   : > { %s1920_s30 = sshll.u32 %s2546_s23, 3 }
  0x10   : > { %999 = vmatpush1.bf16.msra.mxu0 %v1980_v3  ;;  %1939 = vmatpush1.bf16.msra.mxu1 %v1980_v3  ;;  %s2194_s10 = scalar_lea.vmem %s2535_s0, %s1920_s30  ;;  %s2334_s18 = scalar_lea.vmem %s2540_s5, %s1920_s30 }
  0x11   : > { %1000 = vmatprep.subr.bf16.mxu0 %v2114_v1  ;;  %1924 = vmatprep.subr.bf16.mxu1 %v2114_v1  ;;  %v1996_v6 = vld [vmem:[%s2194_s10 + $0x4] ss:$8 sps:$4 sm:$0xff]   ;;  %v1994_v19 = vld [vmem:[%s2194_s10] ss:$8 sps:$4 sm:$0xff]   ;;  %v2000_v21 = vld [vmem:[%s2194_s10 + $0x14] ss:$8 sps:$4 sm:$0xff]  }
  0x12   : > { %v1999_v8 = vld [vmem:[%s2194_s10 + $0x104] ss:$8 sps:$4 sm:$0xff]   ;;  %1026 = vmatprep.mubr.bf16.mxu0 %v1996_v6  ;;  %v1997_v20 = vld [vmem:[%s2194_s10 + $0x100] ss:$8 sps:$4 sm:$0xff]   ;;  %v2002_v22 = vld [vmem:[%s2194_s10 + $0x114] ss:$8 sps:$4 sm:$0xff]  }
  0x13   : > { %1154 = vmatprep.mubr.bf16.mxu1 %v1999_v8  ;;  %v2004_v23 = vld [vmem:[%s2194_s10 + $0x10] ss:$8 sps:$4 sm:$0xff]   ;;  %v2006_v25 = vld [vmem:[%s2194_s10 + $0x24] ss:$8 sps:$4 sm:$0xff]   ;;  %v2010_v27 = vld [vmem:[%s2194_s10 + $0x20] ss:$8 sps:$4 sm:$0xff]  }
  0x14   : > { %1001 = vmatpush1.bf16.msra.mxu0 %v1981_v4  ;;  %1940 = vmatpush1.bf16.msra.mxu1 %v1981_v4  ;;  %v2005_v24 = vld [vmem:[%s2194_s10 + $0x110] ss:$8 sps:$4 sm:$0xff]   ;;  %v2008_v26 = vld [vmem:[%s2194_s10 + $0x124] ss:$8 sps:$4 sm:$0xff]   ;;  %v2011_v28 = vld [vmem:[%s2194_s10 + $0x120] ss:$8 sps:$4 sm:$0xff]  }
  0x15   : > { %1002 = vmatprep.subr.bf16.mxu0 %v2114_v1  ;;  %1925 = vmatprep.subr.bf16.mxu1 %v2114_v1  ;;  %v2012_v29 = vld [vmem:[%s2194_s10 + $0x34] ss:$8 sps:$4 sm:$0xff]   ;;  %v2016_v31 = vld [vmem:[%s2194_s10 + $0x30] ss:$8 sps:$4 sm:$0xff]   ;;  %v2018_v33 = vld [vmem:[%s2194_s10 + $0x44] ss:$8 sps:$4 sm:$0xff]  }
  0x16   : > { %v2014_v30 = vld [vmem:[%s2194_s10 + $0x134] ss:$8 sps:$4 sm:$0xff]   ;;  %v2017_v32 = vld [vmem:[%s2194_s10 + $0x130] ss:$8 sps:$4 sm:$0xff]   ;;  %v2020_v34 = vld [vmem:[%s2194_s10 + $0x144] ss:$8 sps:$4 sm:$0xff]  }
  0x17   : > { %v2022_v35 = vld [vmem:[%s2194_s10 + $0x40] ss:$8 sps:$4 sm:$0xff]   ;;  %v2024_v37 = vld [vmem:[%s2194_s10 + $0x54] ss:$8 sps:$4 sm:$0xff]   ;;  %v2028_v39 = vld [vmem:[%s2194_s10 + $0x50] ss:$8 sps:$4 sm:$0xff]  }
  0x18   : > { %1003 = vmatpush1.bf16.msra.mxu0 %v1982_v5  ;;  %1941 = vmatpush1.bf16.msra.mxu1 %v1982_v5  ;;  %v2023_v36 = vld [vmem:[%s2194_s10 + $0x140] ss:$8 sps:$4 sm:$0xff]   ;;  %v2026_v38 = vld [vmem:[%s2194_s10 + $0x154] ss:$8 sps:$4 sm:$0xff]   ;;  %v2029_v40 = vld [vmem:[%s2194_s10 + $0x150] ss:$8 sps:$4 sm:$0xff]  }
  0x19   : > { %1004 = vmatprep.subr.bf16.mxu0 %v2114_v1  ;;  %1926 = vmatprep.subr.bf16.mxu1 %v2114_v1  ;;  %v2030_v41 = vld [vmem:[%s2194_s10 + $0x64] ss:$8 sps:$4 sm:$0xff]   ;;  %v2034_v43 = vld [vmem:[%s2194_s10 + $0x60] ss:$8 sps:$4 sm:$0xff]   ;;  %v2036_v45 = vld [vmem:[%s2194_s10 + $0x74] ss:$8 sps:$4 sm:$0xff]  }
  0x1a   : > { %v2032_v42 = vld [vmem:[%s2194_s10 + $0x164] ss:$8 sps:$4 sm:$0xff]   ;;  %v2035_v44 = vld [vmem:[%s2194_s10 + $0x160] ss:$8 sps:$4 sm:$0xff]   ;;  %v2038_v46 = vld [vmem:[%s2194_s10 + $0x174] ss:$8 sps:$4 sm:$0xff]  }
  0x1b   : > { %v2040_v47 = vld [vmem:[%s2194_s10 + $0x70] ss:$8 sps:$4 sm:$0xff]   ;;  %v2042_v49 = vld [vmem:[%s2194_s10 + $0x84] ss:$8 sps:$4 sm:$0xff]   ;;  %v2046_v51 = vld [vmem:[%s2194_s10 + $0x80] ss:$8 sps:$4 sm:$0xff]  }
  0x1c   : > { %1005 = vmatpush1.bf16.msra.mxu0 %v1983_v7  ;;  %1942 = vmatpush1.bf16.msra.mxu1 %v1983_v7  ;;  %v2041_v48 = vld [vmem:[%s2194_s10 + $0x170] ss:$8 sps:$4 sm:$0xff]   ;;  %v2044_v50 = vld [vmem:[%s2194_s10 + $0x184] ss:$8 sps:$4 sm:$0xff]   ;;  %v2047_v52 = vld [vmem:[%s2194_s10 + $0x180] ss:$8 sps:$4 sm:$0xff]  }
  0x1d   : > { %1006 = vmatprep.subr.bf16.mxu0 %v2114_v1  ;;  %1927 = vmatprep.subr.bf16.mxu1 %v2114_v1  ;;  %v2048_v53 = vld [vmem:[%s2194_s10 + $0x94] ss:$8 sps:$4 sm:$0xff]   ;;  %v2052_v55 = vld [vmem:[%s2194_s10 + $0x90] ss:$8 sps:$4 sm:$0xff]   ;;  %v2054_v57 = vld [vmem:[%s2194_s10 + $0xa4] ss:$8 sps:$4 sm:$0xff]  }
  0x1e   : > { %v2050_v54 = vld [vmem:[%s2194_s10 + $0x194] ss:$8 sps:$4 sm:$0xff]   ;;  %v2053_v56 = vld [vmem:[%s2194_s10 + $0x190] ss:$8 sps:$4 sm:$0xff]   ;;  %v2056_v58 = vld [vmem:[%s2194_s10 + $0x1a4] ss:$8 sps:$4 sm:$0xff]  }
  0x1f   : > { %v2058_v59 = vld [vmem:[%s2194_s10 + $0xa0] ss:$8 sps:$4 sm:$0xff]   ;;  %v2060_v61 = vld [vmem:[%s2194_s10 + $0xb4] ss:$8 sps:$4 sm:$0xff]   ;;  %v2064_v63 = vld [vmem:[%s2194_s10 + $0xb0] ss:$8 sps:$4 sm:$0xff]  }
  0x20   : > { %1007 = vmatpush1.bf16.msra.mxu0 %v1984_v9  ;;  %1943 = vmatpush1.bf16.msra.mxu1 %v1984_v9  ;;  %v2059_v60 = vld [vmem:[%s2194_s10 + $0x1a0] ss:$8 sps:$4 sm:$0xff]   ;;  %v2062_v62 = vld [vmem:[%s2194_s10 + $0x1b4] ss:$8 sps:$4 sm:$0xff]   ;;  %v2065_v0 = vld [vmem:[%s2194_s10 + $0x1b0] ss:$8 sps:$4 sm:$0xff]  }
  0x21   : > { %1008 = vmatprep.subr.bf16.mxu0 %v2114_v1  ;;  %1928 = vmatprep.subr.bf16.mxu1 %v2114_v1  ;;  %v2068_v2 = vld [vmem:[%s2194_s10 + $0x1c4] ss:$8 sps:$4 sm:$0xff]   ;;  %v2070_v3 = vld [vmem:[%s2194_s10 + $0xc0] ss:$8 sps:$4 sm:$0xff]   ;;  %v2072_v5 = vld [vmem:[%s2194_s10 + $0xd4] ss:$8 sps:$4 sm:$0xff]  }
  0x22   : > { %v2071_v4 = vld [vmem:[%s2194_s10 + $0x1c0] ss:$8 sps:$4 sm:$0xff]   ;;  %v2074_v6 = vld [vmem:[%s2194_s10 + $0x1d4] ss:$8 sps:$4 sm:$0xff]   ;;  %v2076_v7 = vld [vmem:[%s2194_s10 + $0xd0] ss:$8 sps:$4 sm:$0xff]  }
  0x23   : > { %v2077_v8 = vld [vmem:[%s2194_s10 + $0x1d0] ss:$8 sps:$4 sm:$0xff]   ;;  %v2078_v9 = vld [vmem:[%s2194_s10 + $0xe4] ss:$8 sps:$4 sm:$0xff]  }
  0x24   : > { %1009 = vmatpush1.bf16.msra.mxu0 %v1985_v10  ;;  %1944 = vmatpush1.bf16.msra.mxu1 %v1985_v10  ;;  %v2080_v10 = vld [vmem:[%s2194_s10 + $0x1e4] ss:$8 sps:$4 sm:$0xff]  }
  0x25   : > { %1010 = vmatprep.subr.bf16.mxu0 %v2114_v1  ;;  %1929 = vmatprep.subr.bf16.mxu1 %v2114_v1 }
  0x28   : > { %1011 = vmatpush1.bf16.msra.mxu0 %v1986_v11  ;;  %1945 = vmatpush1.bf16.msra.mxu1 %v1986_v11  ;;  %v2082_v11 = vld [vmem:[%s2194_s10 + $0xe0] ss:$8 sps:$4 sm:$0xff]  }
  0x29   : > { %1012 = vmatprep.subr.bf16.mxu0 %v2114_v1  ;;  %1930 = vmatprep.subr.bf16.mxu1 %v2114_v1 }
  0x2c   : > { %1013 = vmatpush1.bf16.msra.mxu0 %v1987_v12  ;;  %1946 = vmatpush1.bf16.msra.mxu1 %v1987_v12  ;;  %v2083_v12 = vld [vmem:[%s2194_s10 + $0x1e0] ss:$8 sps:$4 sm:$0xff]  }
  0x2d   : > { %1014 = vmatprep.subr.bf16.mxu0 %v2114_v1  ;;  %1931 = vmatprep.subr.bf16.mxu1 %v2114_v1 }
  0x30   : > { %1015 = vmatpush1.bf16.msra.mxu0 %v1988_v13  ;;  %1947 = vmatpush1.bf16.msra.mxu1 %v1988_v13  ;;  %v2084_v13 = vld [vmem:[%s2194_s10 + $0xf4] ss:$8 sps:$4 sm:$0xff]  }
  0x31   : > { %1016 = vmatprep.subr.bf16.mxu0 %v2114_v1  ;;  %1932 = vmatprep.subr.bf16.mxu1 %v2114_v1 }
  0x34   : > { %1017 = vmatpush1.bf16.msra.mxu0 %v1989_v14  ;;  %1948 = vmatpush1.bf16.msra.mxu1 %v1989_v14  ;;  %v2086_v14 = vld [vmem:[%s2194_s10 + $0x1f4] ss:$8 sps:$4 sm:$0xff]  }
  0x35   : > { %1018 = vmatprep.subr.bf16.mxu0 %v2114_v1  ;;  %1933 = vmatprep.subr.bf16.mxu1 %v2114_v1 }
  0x38   : > { %1019 = vmatpush1.bf16.msra.mxu0 %v1990_v15  ;;  %1949 = vmatpush1.bf16.msra.mxu1 %v1990_v15  ;;  %v2088_v15 = vld [vmem:[%s2194_s10 + $0xf0] ss:$8 sps:$4 sm:$0xff]  }
  0x39   : > { %1020 = vmatprep.subr.bf16.mxu0 %v2114_v1  ;;  %1934 = vmatprep.subr.bf16.mxu1 %v2114_v1 }
  0x3c   : > { %1021 = vmatpush1.bf16.msra.mxu0 %v1991_v16  ;;  %1950 = vmatpush1.bf16.msra.mxu1 %v1991_v16  ;;  %v2089_v16 = vld [vmem:[%s2194_s10 + $0x1f0] ss:$8 sps:$4 sm:$0xff]  }
  0x3d   : > { %1022 = vmatprep.subr.bf16.mxu0 %v2114_v1  ;;  %1935 = vmatprep.subr.bf16.mxu1 %v2114_v1 }
  0x40   : > { %1023 = vmatpush1.bf16.msra.mxu0 %v1992_v17  ;;  %1951 = vmatpush1.bf16.msra.mxu1 %v1992_v17  ;;  %v2320_v17 = vld [vmem:[%s2537_s2] ss:$0 sm:$0xff] }
  0x41   : > { %1024 = vmatprep.subr.bf16.mxu0 %v2114_v1  ;;  %1936 = vmatprep.subr.bf16.mxu1 %v2114_v1  ;;  %v2066_v1 = vld [vmem:[%s2194_s10 + $0xc4] ss:$8 sps:$4 sm:$0xff]  }
  0x44   : > { %1025 = vmatpush1.bf16.msra.mxu0 %v1993_v18  ;;  %1952 = vmatpush1.bf16.msra.mxu1 %v1993_v18 }
  0x47   : > { %1027 = vmatmul.mubr.bf16.vlgmr.msra.gmra.mrb[0].mxu0 %v1994_v19  ;;  %1155 = vmatmul.mubr.bf16.vlgmr.msra.gmra.mrb[0].mxu1 %v1997_v20  ;;  %v2325_v19 = vld [vmem:[%s2538_s3] ss:$0 sm:$0xff] }
  0x48   : > { %1034 = vmatprep.mubr.bf16.mxu0 %v2000_v21  ;;  %1162 = vmatprep.mubr.bf16.mxu1 %v2002_v22 }
  0x4f   : > { %1035 = vmatmul.mubr.bf16.gmra.mrb[4].mxu0 %v2004_v23  ;;  %1163 = vmatmul.mubr.bf16.gmra.mrb[4].mxu1 %v2005_v24 }
  0x50   : > { %1042 = vmatprep.mubr.bf16.mxu0 %v2006_v25  ;;  %1170 = vmatprep.mubr.bf16.mxu1 %v2008_v26 }
  0x57   : > { %1043 = vmatmul.mubr.bf16.gmra.mrb[8].mxu0 %v2010_v27  ;;  %1171 = vmatmul.mubr.bf16.gmra.mrb[8].mxu1 %v2011_v28 }
  0x58   : > { %1050 = vmatprep.mubr.bf16.mxu0 %v2012_v29  ;;  %1178 = vmatprep.mubr.bf16.mxu1 %v2014_v30 }
  0x5f   : > { %1051 = vmatmul.mubr.bf16.gmra.mrb[12].mxu0 %v2016_v31  ;;  %1179 = vmatmul.mubr.bf16.gmra.mrb[12].mxu1 %v2017_v32 }
  0x60   : > { %1058 = vmatprep.mubr.bf16.mxu0 %v2018_v33  ;;  %1186 = vmatprep.mubr.bf16.mxu1 %v2020_v34 }
  0x67   : > { %1059 = vmatmul.mubr.bf16.gmra.mrb[16].mxu0 %v2022_v35  ;;  %1187 = vmatmul.mubr.bf16.gmra.mrb[16].mxu1 %v2023_v36 }
  0x68   : > { %1066 = vmatprep.mubr.bf16.mxu0 %v2024_v37  ;;  %1194 = vmatprep.mubr.bf16.mxu1 %v2026_v38 }
  0x6f   : > { %1067 = vmatmul.mubr.bf16.gmra.mrb[20].mxu0 %v2028_v39  ;;  %1195 = vmatmul.mubr.bf16.gmra.mrb[20].mxu1 %v2029_v40 }
  0x70   : > { %1074 = vmatprep.mubr.bf16.mxu0 %v2030_v41  ;;  %1202 = vmatprep.mubr.bf16.mxu1 %v2032_v42 }
  0x77   : > { %1075 = vmatmul.mubr.bf16.gmra.mrb[24].mxu0 %v2034_v43  ;;  %1203 = vmatmul.mubr.bf16.gmra.mrb[24].mxu1 %v2035_v44 }
  0x78   : > { %1082 = vmatprep.mubr.bf16.mxu0 %v2036_v45  ;;  %1210 = vmatprep.mubr.bf16.mxu1 %v2038_v46 }
  0x7f   : > { %1083 = vmatmul.mubr.bf16.gmra.mrb[28].mxu0 %v2040_v47  ;;  %1211 = vmatmul.mubr.bf16.gmra.mrb[28].mxu1 %v2041_v48 }
  0x80   : > { %1090 = vmatprep.mubr.bf16.mxu0 %v2042_v49  ;;  %1218 = vmatprep.mubr.bf16.mxu1 %v2044_v50 }
  0x87   : > { %1091 = vmatmul.mubr.bf16.gmra.mrb[32].mxu0 %v2046_v51  ;;  %1219 = vmatmul.mubr.bf16.gmra.mrb[32].mxu1 %v2047_v52 }
  0x88   : > { %1098 = vmatprep.mubr.bf16.mxu0 %v2048_v53  ;;  %1226 = vmatprep.mubr.bf16.mxu1 %v2050_v54 }
  0x8f   : > { %1099 = vmatmul.mubr.bf16.gmra.mrb[36].mxu0 %v2052_v55  ;;  %1227 = vmatmul.mubr.bf16.gmra.mrb[36].mxu1 %v2053_v56 }
  0x90   : > { %1106 = vmatprep.mubr.bf16.mxu0 %v2054_v57  ;;  %1234 = vmatprep.mubr.bf16.mxu1 %v2056_v58 }
  0x97   : > { %1107 = vmatmul.mubr.bf16.gmra.mrb[40].mxu0 %v2058_v59  ;;  %1235 = vmatmul.mubr.bf16.gmra.mrb[40].mxu1 %v2059_v60 }
  0x98   : > { %1114 = vmatprep.mubr.bf16.mxu0 %v2060_v61  ;;  %1242 = vmatprep.mubr.bf16.mxu1 %v2062_v62 }
  0x9f   : > { %1115 = vmatmul.mubr.bf16.gmra.mrb[44].mxu0 %v2064_v63  ;;  %1243 = vmatmul.mubr.bf16.gmra.mrb[44].mxu1 %v2065_v0 }
  0xa0   : > { %1122 = vmatprep.mubr.bf16.mxu0 %v2066_v1  ;;  %1250 = vmatprep.mubr.bf16.mxu1 %v2068_v2 }
  0xa7   : > { %1123 = vmatmul.mubr.bf16.gmra.mrb[48].mxu0 %v2070_v3  ;;  %1251 = vmatmul.mubr.bf16.gmra.mrb[48].mxu1 %v2071_v4 }
  0xa8   : > { %1130 = vmatprep.mubr.bf16.mxu0 %v2072_v5  ;;  %1258 = vmatprep.mubr.bf16.mxu1 %v2074_v6 }
  0xaf   : > { %1131 = vmatmul.mubr.bf16.gmra.mrb[52].mxu0 %v2076_v7  ;;  %1259 = vmatmul.mubr.bf16.gmra.mrb[52].mxu1 %v2077_v8 }
  0xb0   : > { %1138 = vmatprep.mubr.bf16.mxu0 %v2078_v9  ;;  %1266 = vmatprep.mubr.bf16.mxu1 %v2080_v10 }
  0xb7   : > { %1139 = vmatmul.mubr.bf16.gmra.mrb[56].mxu0 %v2082_v11  ;;  %1267 = vmatmul.mubr.bf16.gmra.mrb[56].mxu1 %v2083_v12 }
  0xb8   : > { %1146 = vmatprep.mubr.bf16.mxu0 %v2084_v13  ;;  %1274 = vmatprep.mubr.bf16.mxu1 %v2086_v14 }
  0xbf   : > { %1147 = vmatmul.mubr.bf16.gmra.mrb[60].mxu0 %v2088_v15  ;;  %1275 = vmatmul.mubr.bf16.gmra.mrb[60].mxu1 %v2089_v16 }
 0x11a   : > { %v1028_v18 = vpop.f32.mrb[0].mxu0  ;;  %v1156_v20 = vpop.f32.mrb[0].mxu1 }
 0x11b   : > { %v1485_v21 = vmul.f32 %v2320_v17, %v1028_v18  ;;  %v1517_v22 = vmul.f32 %v2320_v17, %v1156_v20  ;;  %v1030_v23 = vpop.f32.mrb[1].mxu0  ;;  %v1158_v24 = vpop.f32.mrb[1].mxu1 }
 0x11c   : > { %v1031_v25 = vpop.f32.mrb[2].mxu0  ;;  %v1159_v26 = vpop.f32.mrb[2].mxu1 }
 0x11d   : > { %v1556_v27 = vadd.f32 %v2325_v19, %v1485_v21  ;;  %v1588_v28 = vadd.f32 %v2325_v19, %v1517_v22  ;;  %v1486_v29 = vmul.f32 %v2320_v17, %v1031_v25  ;;  %v1518_v30 = vmul.f32 %v2320_v17, %v1159_v26  ;;  %v1033_v31 = vpop.f32.mrb[3].mxu0  ;;  %v1161_v32 = vpop.f32.mrb[3].mxu1 }
 0x11f   : > { %1620 = vst [vmem:[%s2334_s18] sm:$0xff] %v1556_v27  ;;  %1652 = vst [vmem:[%s2334_s18 + $0x100] sm:$0xff] %v1588_v28  ;;  %v1557_v33 = vadd.f32 %v2325_v19, %v1486_v29  ;;  %v1589_v34 = vadd.f32 %v2325_v19, %v1518_v30 }
 0x121   : > { %1621 = vst [vmem:[%s2334_s18 + $0x8] sm:$0xff] %v1557_v33  ;;  %1653 = vst [vmem:[%s2334_s18 + $0x108] sm:$0xff] %v1589_v34 }
 0x122   : > { %v1036_v35 = vpop.f32.mrb[4].mxu0  ;;  %v1164_v36 = vpop.f32.mrb[4].mxu1 }
 0x123   : > { %v1487_v37 = vmul.f32 %v2320_v17, %v1036_v35  ;;  %v1519_v38 = vmul.f32 %v2320_v17, %v1164_v36  ;;  %v1038_v39 = vpop.f32.mrb[5].mxu0  ;;  %v1166_v40 = vpop.f32.mrb[5].mxu1 }
 0x124   : > { %v1039_v41 = vpop.f32.mrb[6].mxu0  ;;  %v1167_v42 = vpop.f32.mrb[6].mxu1 }
 0x125   : > { %v1558_v43 = vadd.f32 %v2325_v19, %v1487_v37  ;;  %v1590_v44 = vadd.f32 %v2325_v19, %v1519_v38  ;;  %v1488_v45 = vmul.f32 %v2320_v17, %v1039_v41  ;;  %v1520_v46 = vmul.f32 %v2320_v17, %v1167_v42  ;;  %v1041_v47 = vpop.f32.mrb[7].mxu0  ;;  %v1169_v48 = vpop.f32.mrb[7].mxu1 }
 0x127   : > { %1622 = vst [vmem:[%s2334_s18 + $0x10] sm:$0xff] %v1558_v43  ;;  %1654 = vst [vmem:[%s2334_s18 + $0x110] sm:$0xff] %v1590_v44  ;;  %v1559_v49 = vadd.f32 %v2325_v19, %v1488_v45  ;;  %v1591_v50 = vadd.f32 %v2325_v19, %v1520_v46 }
 0x129   : > { %1623 = vst [vmem:[%s2334_s18 + $0x18] sm:$0xff] %v1559_v49  ;;  %1655 = vst [vmem:[%s2334_s18 + $0x118] sm:$0xff] %v1591_v50 }
 0x12a   : > { %v1044_v51 = vpop.f32.mrb[8].mxu0  ;;  %v1172_v52 = vpop.f32.mrb[8].mxu1 }
 0x12b   : > { %v1489_v53 = vmul.f32 %v2320_v17, %v1044_v51  ;;  %v1521_v54 = vmul.f32 %v2320_v17, %v1172_v52  ;;  %v1046_v55 = vpop.f32.mrb[9].mxu0  ;;  %v1174_v56 = vpop.f32.mrb[9].mxu1 }
 0x12c   : > { %v1047_v57 = vpop.f32.mrb[10].mxu0  ;;  %v1175_v58 = vpop.f32.mrb[10].mxu1 }
 0x12d   : > { %v1560_v59 = vadd.f32 %v2325_v19, %v1489_v53  ;;  %v1592_v60 = vadd.f32 %v2325_v19, %v1521_v54  ;;  %v1490_v61 = vmul.f32 %v2320_v17, %v1047_v57  ;;  %v1522_v62 = vmul.f32 %v2320_v17, %v1175_v58  ;;  %v1049_v63 = vpop.f32.mrb[11].mxu0  ;;  %v1177_v0 = vpop.f32.mrb[11].mxu1 }
 0x12f   : > { %1624 = vst [vmem:[%s2334_s18 + $0x20] sm:$0xff] %v1560_v59  ;;  %1656 = vst [vmem:[%s2334_s18 + $0x120] sm:$0xff] %v1592_v60  ;;  %v1561_v1 = vadd.f32 %v2325_v19, %v1490_v61  ;;  %v1593_v2 = vadd.f32 %v2325_v19, %v1522_v62 }
 0x131   : > { %1625 = vst [vmem:[%s2334_s18 + $0x28] sm:$0xff] %v1561_v1  ;;  %1657 = vst [vmem:[%s2334_s18 + $0x128] sm:$0xff] %v1593_v2 }
 0x132   : > { %v1052_v3 = vpop.f32.mrb[12].mxu0  ;;  %v1180_v4 = vpop.f32.mrb[12].mxu1 }
 0x133   : > { %v1491_v5 = vmul.f32 %v2320_v17, %v1052_v3  ;;  %v1523_v6 = vmul.f32 %v2320_v17, %v1180_v4  ;;  %v1054_v7 = vpop.f32.mrb[13].mxu0  ;;  %v1182_v8 = vpop.f32.mrb[13].mxu1 }
 0x134   : > { %v1055_v9 = vpop.f32.mrb[14].mxu0  ;;  %v1183_v10 = vpop.f32.mrb[14].mxu1 }
 0x135   : > { %v1562_v11 = vadd.f32 %v2325_v19, %v1491_v5  ;;  %v1594_v12 = vadd.f32 %v2325_v19, %v1523_v6  ;;  %v1492_v13 = vmul.f32 %v2320_v17, %v1055_v9  ;;  %v1524_v14 = vmul.f32 %v2320_v17, %v1183_v10  ;;  %v1057_v15 = vpop.f32.mrb[15].mxu0  ;;  %v1185_v16 = vpop.f32.mrb[15].mxu1 }
 0x137   : > { %1626 = vst [vmem:[%s2334_s18 + $0x30] sm:$0xff] %v1562_v11  ;;  %1658 = vst [vmem:[%s2334_s18 + $0x130] sm:$0xff] %v1594_v12  ;;  %v1563_v18 = vadd.f32 %v2325_v19, %v1492_v13  ;;  %v1595_v20 = vadd.f32 %v2325_v19, %v1524_v14 }
 0x139   : > { %1627 = vst [vmem:[%s2334_s18 + $0x38] sm:$0xff] %v1563_v18  ;;  %1659 = vst [vmem:[%s2334_s18 + $0x138] sm:$0xff] %v1595_v20 }
 0x13a   : > { %v1060_v21 = vpop.f32.mrb[16].mxu0  ;;  %v1188_v22 = vpop.f32.mrb[16].mxu1 }
 0x13b   : > { %v1493_v23 = vmul.f32 %v2320_v17, %v1060_v21  ;;  %v1525_v24 = vmul.f32 %v2320_v17, %v1188_v22  ;;  %v1062_v25 = vpop.f32.mrb[17].mxu0  ;;  %v1190_v26 = vpop.f32.mrb[17].mxu1 }
 0x13c   : > { %v1063_v27 = vpop.f32.mrb[18].mxu0  ;;  %v1191_v28 = vpop.f32.mrb[18].mxu1 }
 0x13d   : > { %v1564_v29 = vadd.f32 %v2325_v19, %v1493_v23  ;;  %v1596_v30 = vadd.f32 %v2325_v19, %v1525_v24  ;;  %v1494_v31 = vmul.f32 %v2320_v17, %v1063_v27  ;;  %v1526_v32 = vmul.f32 %v2320_v17, %v1191_v28  ;;  %v1065_v33 = vpop.f32.mrb[19].mxu0  ;;  %v1193_v34 = vpop.f32.mrb[19].mxu1 }
 0x13f   : > { %1628 = vst [vmem:[%s2334_s18 + $0x40] sm:$0xff] %v1564_v29  ;;  %1660 = vst [vmem:[%s2334_s18 + $0x140] sm:$0xff] %v1596_v30  ;;  %v1565_v35 = vadd.f32 %v2325_v19, %v1494_v31  ;;  %v1597_v36 = vadd.f32 %v2325_v19, %v1526_v32 }
 0x141   : > { %1629 = vst [vmem:[%s2334_s18 + $0x48] sm:$0xff] %v1565_v35  ;;  %1661 = vst [vmem:[%s2334_s18 + $0x148] sm:$0xff] %v1597_v36 }
 0x142   : > { %v1068_v37 = vpop.f32.mrb[20].mxu0  ;;  %v1196_v38 = vpop.f32.mrb[20].mxu1 }
 0x143   : > { %v1495_v39 = vmul.f32 %v2320_v17, %v1068_v37  ;;  %v1527_v40 = vmul.f32 %v2320_v17, %v1196_v38  ;;  %v1070_v41 = vpop.f32.mrb[21].mxu0  ;;  %v1198_v42 = vpop.f32.mrb[21].mxu1 }
 0x144   : > { %v1071_v43 = vpop.f32.mrb[22].mxu0  ;;  %v1199_v44 = vpop.f32.mrb[22].mxu1 }
 0x145   : > { %v1566_v45 = vadd.f32 %v2325_v19, %v1495_v39  ;;  %v1598_v46 = vadd.f32 %v2325_v19, %v1527_v40  ;;  %v1496_v47 = vmul.f32 %v2320_v17, %v1071_v43  ;;  %v1528_v48 = vmul.f32 %v2320_v17, %v1199_v44  ;;  %v1073_v49 = vpop.f32.mrb[23].mxu0  ;;  %v1201_v50 = vpop.f32.mrb[23].mxu1 }
 0x147   : > { %1630 = vst [vmem:[%s2334_s18 + $0x50] sm:$0xff] %v1566_v45  ;;  %1662 = vst [vmem:[%s2334_s18 + $0x150] sm:$0xff] %v1598_v46  ;;  %v1567_v51 = vadd.f32 %v2325_v19, %v1496_v47  ;;  %v1599_v52 = vadd.f32 %v2325_v19, %v1528_v48 }
 0x149   : > { %1631 = vst [vmem:[%s2334_s18 + $0x58] sm:$0xff] %v1567_v51  ;;  %1663 = vst [vmem:[%s2334_s18 + $0x158] sm:$0xff] %v1599_v52 }
 0x14a   : > { %v1076_v53 = vpop.f32.mrb[24].mxu0  ;;  %v1204_v54 = vpop.f32.mrb[24].mxu1 }
 0x14b   : > { %v1497_v55 = vmul.f32 %v2320_v17, %v1076_v53  ;;  %v1529_v56 = vmul.f32 %v2320_v17, %v1204_v54  ;;  %v1078_v57 = vpop.f32.mrb[25].mxu0  ;;  %v1206_v58 = vpop.f32.mrb[25].mxu1 }
 0x14c   : > { %v1079_v59 = vpop.f32.mrb[26].mxu0  ;;  %v1207_v60 = vpop.f32.mrb[26].mxu1 }
 0x14d   : > { %v1568_v61 = vadd.f32 %v2325_v19, %v1497_v55  ;;  %v1600_v62 = vadd.f32 %v2325_v19, %v1529_v56  ;;  %v1498_v63 = vmul.f32 %v2320_v17, %v1079_v59  ;;  %v1530_v0 = vmul.f32 %v2320_v17, %v1207_v60  ;;  %v1081_v1 = vpop.f32.mrb[27].mxu0  ;;  %v1209_v2 = vpop.f32.mrb[27].mxu1 }
 0x14f   : > { %1632 = vst [vmem:[%s2334_s18 + $0x60] sm:$0xff] %v1568_v61  ;;  %1664 = vst [vmem:[%s2334_s18 + $0x160] sm:$0xff] %v1600_v62  ;;  %v1569_v3 = vadd.f32 %v2325_v19, %v1498_v63  ;;  %v1601_v4 = vadd.f32 %v2325_v19, %v1530_v0 }
 0x151   : > { %1633 = vst [vmem:[%s2334_s18 + $0x68] sm:$0xff] %v1569_v3  ;;  %1665 = vst [vmem:[%s2334_s18 + $0x168] sm:$0xff] %v1601_v4 }
 0x152   : > { %v1084_v5 = vpop.f32.mrb[28].mxu0  ;;  %v1212_v6 = vpop.f32.mrb[28].mxu1 }
 0x153   : > { %v1499_v7 = vmul.f32 %v2320_v17, %v1084_v5  ;;  %v1531_v8 = vmul.f32 %v2320_v17, %v1212_v6  ;;  %v1086_v9 = vpop.f32.mrb[29].mxu0  ;;  %v1214_v10 = vpop.f32.mrb[29].mxu1 }
 0x154   : > { %v1087_v11 = vpop.f32.mrb[30].mxu0  ;;  %v1215_v12 = vpop.f32.mrb[30].mxu1 }
 0x155   : > { %v1570_v13 = vadd.f32 %v2325_v19, %v1499_v7  ;;  %v1602_v14 = vadd.f32 %v2325_v19, %v1531_v8  ;;  %v1500_v15 = vmul.f32 %v2320_v17, %v1087_v11  ;;  %v1532_v16 = vmul.f32 %v2320_v17, %v1215_v12  ;;  %v1089_v18 = vpop.f32.mrb[31].mxu0  ;;  %v1217_v20 = vpop.f32.mrb[31].mxu1 }
 0x157   : > { %1634 = vst [vmem:[%s2334_s18 + $0x70] sm:$0xff] %v1570_v13  ;;  %1666 = vst [vmem:[%s2334_s18 + $0x170] sm:$0xff] %v1602_v14  ;;  %v1571_v21 = vadd.f32 %v2325_v19, %v1500_v15  ;;  %v1603_v22 = vadd.f32 %v2325_v19, %v1532_v16 }
 0x159   : > { %1635 = vst [vmem:[%s2334_s18 + $0x78] sm:$0xff] %v1571_v21  ;;  %1667 = vst [vmem:[%s2334_s18 + $0x178] sm:$0xff] %v1603_v22 }
 0x15a   : > { %v1092_v23 = vpop.f32.mrb[32].mxu0  ;;  %v1220_v24 = vpop.f32.mrb[32].mxu1 }
 0x15b   : > { %v1501_v25 = vmul.f32 %v2320_v17, %v1092_v23  ;;  %v1533_v26 = vmul.f32 %v2320_v17, %v1220_v24  ;;  %v1094_v27 = vpop.f32.mrb[33].mxu0  ;;  %v1222_v28 = vpop.f32.mrb[33].mxu1 }
 0x15c   : > { %v1095_v29 = vpop.f32.mrb[34].mxu0  ;;  %v1223_v30 = vpop.f32.mrb[34].mxu1 }
 0x15d   : > { %v1572_v31 = vadd.f32 %v2325_v19, %v1501_v25  ;;  %v1604_v32 = vadd.f32 %v2325_v19, %v1533_v26  ;;  %v1502_v33 = vmul.f32 %v2320_v17, %v1095_v29  ;;  %v1534_v34 = vmul.f32 %v2320_v17, %v1223_v30  ;;  %v1097_v35 = vpop.f32.mrb[35].mxu0  ;;  %v1225_v36 = vpop.f32.mrb[35].mxu1 }
 0x15f   : > { %1636 = vst [vmem:[%s2334_s18 + $0x80] sm:$0xff] %v1572_v31  ;;  %1668 = vst [vmem:[%s2334_s18 + $0x180] sm:$0xff] %v1604_v32  ;;  %v1573_v37 = vadd.f32 %v2325_v19, %v1502_v33  ;;  %v1605_v38 = vadd.f32 %v2325_v19, %v1534_v34 }
 0x161   : > { %1637 = vst [vmem:[%s2334_s18 + $0x88] sm:$0xff] %v1573_v37  ;;  %1669 = vst [vmem:[%s2334_s18 + $0x188] sm:$0xff] %v1605_v38 }
 0x162   : > { %v1100_v39 = vpop.f32.mrb[36].mxu0  ;;  %v1228_v40 = vpop.f32.mrb[36].mxu1 }
 0x163   : > { %v1503_v41 = vmul.f32 %v2320_v17, %v1100_v39  ;;  %v1535_v42 = vmul.f32 %v2320_v17, %v1228_v40  ;;  %v1102_v43 = vpop.f32.mrb[37].mxu0  ;;  %v1230_v44 = vpop.f32.mrb[37].mxu1 }
 0x164   : > { %v1103_v45 = vpop.f32.mrb[38].mxu0  ;;  %v1231_v46 = vpop.f32.mrb[38].mxu1 }
 0x165   : > { %v1574_v47 = vadd.f32 %v2325_v19, %v1503_v41  ;;  %v1606_v48 = vadd.f32 %v2325_v19, %v1535_v42  ;;  %v1504_v49 = vmul.f32 %v2320_v17, %v1103_v45  ;;  %v1536_v50 = vmul.f32 %v2320_v17, %v1231_v46  ;;  %v1105_v51 = vpop.f32.mrb[39].mxu0  ;;  %v1233_v52 = vpop.f32.mrb[39].mxu1 }
 0x167   : > { %1638 = vst [vmem:[%s2334_s18 + $0x90] sm:$0xff] %v1574_v47  ;;  %1670 = vst [vmem:[%s2334_s18 + $0x190] sm:$0xff] %v1606_v48  ;;  %v1575_v53 = vadd.f32 %v2325_v19, %v1504_v49  ;;  %v1607_v54 = vadd.f32 %v2325_v19, %v1536_v50 }
 0x169   : > { %1639 = vst [vmem:[%s2334_s18 + $0x98] sm:$0xff] %v1575_v53  ;;  %1671 = vst [vmem:[%s2334_s18 + $0x198] sm:$0xff] %v1607_v54 }
 0x16a   : > { %v1108_v55 = vpop.f32.mrb[40].mxu0  ;;  %v1236_v56 = vpop.f32.mrb[40].mxu1 }
 0x16b   : > { %v1505_v57 = vmul.f32 %v2320_v17, %v1108_v55  ;;  %v1537_v58 = vmul.f32 %v2320_v17, %v1236_v56  ;;  %v1110_v59 = vpop.f32.mrb[41].mxu0  ;;  %v1238_v60 = vpop.f32.mrb[41].mxu1 }
 0x16c   : > { %v1111_v61 = vpop.f32.mrb[42].mxu0  ;;  %v1239_v62 = vpop.f32.mrb[42].mxu1 }
 0x16d   : > { %v1576_v63 = vadd.f32 %v2325_v19, %v1505_v57  ;;  %v1608_v0 = vadd.f32 %v2325_v19, %v1537_v58  ;;  %v1506_v1 = vmul.f32 %v2320_v17, %v1111_v61  ;;  %v1538_v2 = vmul.f32 %v2320_v17, %v1239_v62  ;;  %v1113_v3 = vpop.f32.mrb[43].mxu0  ;;  %v1241_v4 = vpop.f32.mrb[43].mxu1 }
 0x16f   : > { %1640 = vst [vmem:[%s2334_s18 + $0xa0] sm:$0xff] %v1576_v63  ;;  %1672 = vst [vmem:[%s2334_s18 + $0x1a0] sm:$0xff] %v1608_v0  ;;  %v1577_v5 = vadd.f32 %v2325_v19, %v1506_v1  ;;  %v1609_v6 = vadd.f32 %v2325_v19, %v1538_v2 }
 0x171   : > { %1641 = vst [vmem:[%s2334_s18 + $0xa8] sm:$0xff] %v1577_v5  ;;  %1673 = vst [vmem:[%s2334_s18 + $0x1a8] sm:$0xff] %v1609_v6 }
 0x172   : > { %v1116_v7 = vpop.f32.mrb[44].mxu0  ;;  %v1244_v8 = vpop.f32.mrb[44].mxu1 }
 0x173   : > { %v1507_v9 = vmul.f32 %v2320_v17, %v1116_v7  ;;  %v1539_v10 = vmul.f32 %v2320_v17, %v1244_v8  ;;  %v1118_v11 = vpop.f32.mrb[45].mxu0  ;;  %v1246_v12 = vpop.f32.mrb[45].mxu1 }
 0x174   : > { %v1119_v13 = vpop.f32.mrb[46].mxu0  ;;  %v1247_v14 = vpop.f32.mrb[46].mxu1 }
 0x175   : > { %v1578_v15 = vadd.f32 %v2325_v19, %v1507_v9  ;;  %v1610_v16 = vadd.f32 %v2325_v19, %v1539_v10  ;;  %v1508_v18 = vmul.f32 %v2320_v17, %v1119_v13  ;;  %v1540_v20 = vmul.f32 %v2320_v17, %v1247_v14  ;;  %v1121_v21 = vpop.f32.mrb[47].mxu0  ;;  %v1249_v22 = vpop.f32.mrb[47].mxu1 }
 0x177   : > { %1642 = vst [vmem:[%s2334_s18 + $0xb0] sm:$0xff] %v1578_v15  ;;  %1674 = vst [vmem:[%s2334_s18 + $0x1b0] sm:$0xff] %v1610_v16  ;;  %v1579_v23 = vadd.f32 %v2325_v19, %v1508_v18  ;;  %v1611_v24 = vadd.f32 %v2325_v19, %v1540_v20 }
 0x179   : > { %1643 = vst [vmem:[%s2334_s18 + $0xb8] sm:$0xff] %v1579_v23  ;;  %1675 = vst [vmem:[%s2334_s18 + $0x1b8] sm:$0xff] %v1611_v24 }
 0x17a   : > { %v1124_v25 = vpop.f32.mrb[48].mxu0  ;;  %v1252_v26 = vpop.f32.mrb[48].mxu1 }
 0x17b   : > { %v1509_v27 = vmul.f32 %v2320_v17, %v1124_v25  ;;  %v1541_v28 = vmul.f32 %v2320_v17, %v1252_v26  ;;  %v1126_v29 = vpop.f32.mrb[49].mxu0  ;;  %v1254_v30 = vpop.f32.mrb[49].mxu1 }
 0x17c   : > { %v1127_v31 = vpop.f32.mrb[50].mxu0  ;;  %v1255_v32 = vpop.f32.mrb[50].mxu1 }
 0x17d   : > { %v1580_v33 = vadd.f32 %v2325_v19, %v1509_v27  ;;  %v1612_v34 = vadd.f32 %v2325_v19, %v1541_v28  ;;  %v1510_v35 = vmul.f32 %v2320_v17, %v1127_v31  ;;  %v1542_v36 = vmul.f32 %v2320_v17, %v1255_v32  ;;  %v1129_v37 = vpop.f32.mrb[51].mxu0  ;;  %v1257_v38 = vpop.f32.mrb[51].mxu1 }
 0x17f   : > { %1644 = vst [vmem:[%s2334_s18 + $0xc0] sm:$0xff] %v1580_v33  ;;  %1676 = vst [vmem:[%s2334_s18 + $0x1c0] sm:$0xff] %v1612_v34  ;;  %v1581_v39 = vadd.f32 %v2325_v19, %v1510_v35  ;;  %v1613_v40 = vadd.f32 %v2325_v19, %v1542_v36 }
 0x181   : > { %1645 = vst [vmem:[%s2334_s18 + $0xc8] sm:$0xff] %v1581_v39  ;;  %1677 = vst [vmem:[%s2334_s18 + $0x1c8] sm:$0xff] %v1613_v40 }
 0x182   : > { %v1132_v41 = vpop.f32.mrb[52].mxu0  ;;  %v1260_v42 = vpop.f32.mrb[52].mxu1 }
 0x183   : > { %v1511_v43 = vmul.f32 %v2320_v17, %v1132_v41  ;;  %v1543_v44 = vmul.f32 %v2320_v17, %v1260_v42  ;;  %v1134_v45 = vpop.f32.mrb[53].mxu0  ;;  %v1262_v46 = vpop.f32.mrb[53].mxu1 }
 0x184   : > { %v1135_v47 = vpop.f32.mrb[54].mxu0  ;;  %v1263_v48 = vpop.f32.mrb[54].mxu1 }
 0x185   : > { %v1582_v49 = vadd.f32 %v2325_v19, %v1511_v43  ;;  %v1614_v50 = vadd.f32 %v2325_v19, %v1543_v44  ;;  %v1512_v51 = vmul.f32 %v2320_v17, %v1135_v47  ;;  %v1544_v52 = vmul.f32 %v2320_v17, %v1263_v48  ;;  %v1137_v53 = vpop.f32.mrb[55].mxu0  ;;  %v1265_v54 = vpop.f32.mrb[55].mxu1 }
 0x187   : > { %1646 = vst [vmem:[%s2334_s18 + $0xd0] sm:$0xff] %v1582_v49  ;;  %1678 = vst [vmem:[%s2334_s18 + $0x1d0] sm:$0xff] %v1614_v50  ;;  %v1583_v55 = vadd.f32 %v2325_v19, %v1512_v51  ;;  %v1615_v56 = vadd.f32 %v2325_v19, %v1544_v52 }
 0x189   : > { %1647 = vst [vmem:[%s2334_s18 + $0xd8] sm:$0xff] %v1583_v55  ;;  %1679 = vst [vmem:[%s2334_s18 + $0x1d8] sm:$0xff] %v1615_v56 }
 0x18a   : > { %v1140_v57 = vpop.f32.mrb[56].mxu0  ;;  %v1268_v58 = vpop.f32.mrb[56].mxu1 }
 0x18b   : > { %v1513_v59 = vmul.f32 %v2320_v17, %v1140_v57  ;;  %v1545_v60 = vmul.f32 %v2320_v17, %v1268_v58  ;;  %v1142_v61 = vpop.f32.mrb[57].mxu0  ;;  %v1270_v62 = vpop.f32.mrb[57].mxu1 }
 0x18c   : > { %v1143_v63 = vpop.f32.mrb[58].mxu0  ;;  %v1271_v0 = vpop.f32.mrb[58].mxu1 }
 0x18d   : > { %v1584_v1 = vadd.f32 %v2325_v19, %v1513_v59  ;;  %v1616_v2 = vadd.f32 %v2325_v19, %v1545_v60  ;;  %v1514_v3 = vmul.f32 %v2320_v17, %v1143_v63  ;;  %v1546_v4 = vmul.f32 %v2320_v17, %v1271_v0  ;;  %v1145_v5 = vpop.f32.mrb[59].mxu0  ;;  %v1273_v6 = vpop.f32.mrb[59].mxu1 }
 0x18f   : > { %1648 = vst [vmem:[%s2334_s18 + $0xe0] sm:$0xff] %v1584_v1  ;;  %1680 = vst [vmem:[%s2334_s18 + $0x1e0] sm:$0xff] %v1616_v2  ;;  %v1585_v7 = vadd.f32 %v2325_v19, %v1514_v3  ;;  %v1617_v8 = vadd.f32 %v2325_v19, %v1546_v4 }
 0x191   : > { %1649 = vst [vmem:[%s2334_s18 + $0xe8] sm:$0xff] %v1585_v7  ;;  %1681 = vst [vmem:[%s2334_s18 + $0x1e8] sm:$0xff] %v1617_v8 }
 0x192   : > { %v1148_v9 = vpop.f32.mrb[60].mxu0  ;;  %v1276_v10 = vpop.f32.mrb[60].mxu1 }
 0x193   : > { %v1515_v11 = vmul.f32 %v2320_v17, %v1148_v9  ;;  %v1547_v12 = vmul.f32 %v2320_v17, %v1276_v10  ;;  %v1150_v13 = vpop.f32.mrb[61].mxu0  ;;  %v1278_v14 = vpop.f32.mrb[61].mxu1 }
 0x194   : > { %v1151_v15 = vpop.f32.mrb[62].mxu0  ;;  %v1279_v16 = vpop.f32.mrb[62].mxu1 }
 0x195   : > { %v1586_v18 = vadd.f32 %v2325_v19, %v1515_v11  ;;  %v1618_v20 = vadd.f32 %v2325_v19, %v1547_v12  ;;  %v1516_v21 = vmul.f32 %v2320_v17, %v1151_v15  ;;  %v1548_v22 = vmul.f32 %v2320_v17, %v1279_v16  ;;  %v1153_v23 = vpop.f32.mrb[63].mxu0  ;;  %v1281_v24 = vpop.f32.mrb[63].mxu1 }
 0x197   : > { %1650 = vst [vmem:[%s2334_s18 + $0xf0] sm:$0xff] %v1586_v18  ;;  %1682 = vst [vmem:[%s2334_s18 + $0x1f0] sm:$0xff] %v1618_v20  ;;  %v1587_v25 = vadd.f32 %v2325_v19, %v1516_v21  ;;  %v1619_v26 = vadd.f32 %v2325_v19, %v1548_v22 }
 0x199   : > { %1651 = vst [vmem:[%s2334_s18 + $0xf8] sm:$0xff] %v1587_v25  ;;  %1683 = vst [vmem:[%s2334_s18 + $0x1f8] sm:$0xff] %v1619_v26 }
 0x19a PF: > { %s15_s20 = sadd.s32 1, %s2112_s20   ;;  %s2541_s18 = smov %s2108_s19 }
 0x19b   : > { %p12_p5 = scmp.ge.s32.totalorder %s15_s20, 8   ;;  %s2542_s19 = smov %s2544_s4 }
 0x19d   :  { %14 = sbr.rel (!%p12_p5) target bundleno = 2 (0x2), region = 90 }

</bundles_post_ra>
